<compile_context>
chip_gen: v7x
topology: tpu7x:2x2x1
jax: 0.10.0
libtpu: 0.0.40
codegen_flags: <defaults>
</compile_context>

<pallas_src>
import functools

import jax
import jax.numpy as jnp
from jax.experimental import pallas as pl
from jax.experimental.pallas import tpu as pltpu


def _fused_mlp_kernel(x_ref, *refs, relu_flags, compute_dtype):
    """All MLP layers fused.  Layout: channels on sublanes, points on lanes.

    x_ref:  (C_in, tn)   input tile (points on the lane axis)
    refs:   for each layer l:  w_l (C_out_l, C_in_l)  [BN scale pre-folded],
                               shift_l (C_out_l, 1)   [f32]
            followed by o_ref (C_out_last, tn)
    """
    n_layers = len(relu_flags)
    o_ref = refs[2 * n_layers]

    h = x_ref[...].astype(compute_dtype)              # (C_in, tn)
    y = None
    for li in range(n_layers):
        w = refs[2 * li][...]                         # (C_out, C_in)
        shift = refs[2 * li + 1][...]                 # (C_out, 1)  f32
        # MXU matmul, f32 accumulation.
        y = jnp.dot(w, h, preferred_element_type=jnp.float32)
        # Folded conv-bias + BN shift, f32 epilogue (VPU-native on v5e).
        y = y + shift
        if relu_flags[li]:
            y = jnp.maximum(y, 0.0)
        if li + 1 < n_layers:
            h = y.astype(compute_dtype)
    o_ref[...] = y.astype(o_ref.dtype)


def fused_pointwise_mlp(points, layers, *, tn=8192, compute_dtype=jnp.float32,
                        out_dtype=jnp.float32, vmem_limit_bytes=None):
    """points: [B, C, N].  layers: list of (w[c_out, c_in] with BN scale
    pre-folded, shift[c_out, 1], relu: bool).  Returns [B, C_out_last, N].

    tn sweep guidance: 8192 (default, safe everywhere incl. v5e's 16 MiB
    scoped VMEM) .. 16384 on v6e/v7x (raise vmem_limit_bytes if needed)."""
    B, c_in, N = points.shape
    c_last = layers[-1][0].shape[0]

    # Clamp the lane tile: keep it a multiple of 128 (lane-dense stores,
    # MXU-aligned) but no bigger than N rounded up to 128 (no wasted DMA /
    # compute for small N).  The last partial tile is masked by Pallas.
    tn_eff = min(tn, pl.cdiv(N, 128) * 128)
    n_tiles = pl.cdiv(N, tn_eff)

    relu_flags = tuple(bool(l[2]) for l in layers)
    kernel = functools.partial(
        _fused_mlp_kernel, relu_flags=relu_flags, compute_dtype=compute_dtype)

    # Input blocked directly from [B, C, N]: batch dim squeezed, channels on
    # sublanes, points on lanes.  No wrapper transpose/reshape/pad.
    in_specs = [pl.BlockSpec((None, c_in, tn_eff), lambda b, i: (b, 0, i))]
    operands = [points]
    for (w, shift, _relu) in layers:
        co, ci = w.shape
        # Weights / shift are tiny, VMEM-resident across the whole grid.
        in_specs += [
            pl.BlockSpec((co, ci), lambda b, i: (0, 0)),
            pl.BlockSpec((co, 1), lambda b, i: (0, 0)),
        ]
        operands += [
            w.astype(compute_dtype),
            shift.astype(jnp.float32),
        ]

    compiler_kwargs = dict(dimension_semantics=("parallel", "parallel"))
    if vmem_limit_bytes is not None:
        compiler_kwargs["vmem_limit_bytes"] = vmem_limit_bytes

    out = pl.pallas_call(
        kernel,
        out_shape=jax.ShapeDtypeStruct((B, c_last, N), out_dtype),
        grid_spec=pl.GridSpec(
            grid=(B, n_tiles),
            in_specs=in_specs,
            out_specs=pl.BlockSpec((None, c_last, tn_eff),
                                   lambda b, i: (b, 0, i)),
        ),
        compiler_params=pltpu.CompilerParams(**compiler_kwargs),
    )(*operands)
    return out


def init_mlp_params(key, in_channel, mlp, relu, bn):
    """Deterministic parameters matching nn.Conv2d(c_in, c_out, 1) [+ BN]."""
    dims = [in_channel] + list(mlp)
    params = []
    for i in range(len(dims) - 1):
        c_in, c_out = dims[i], dims[i + 1]
        key, kw, kb, kg, kbeta, km, kv = jax.random.split(key, 7)
        bound = 1.0 / jnp.sqrt(jnp.float32(c_in))
        # Conv2d weight [C_out, C_in, 1, 1] -> stored as [C_out, C_in].
        w = jax.random.uniform(kw, (c_out, c_in), jnp.float32, -bound, bound)
        b = jax.random.uniform(kb, (c_out,), jnp.float32, -bound, bound)
        layer = {"w": w, "bias": b, "relu": bool(relu[i]), "bn": bool(bn[i])}
        if bn[i]:
            layer["gamma"] = jax.random.uniform(kg, (c_out,), jnp.float32, 0.5, 1.5)
            layer["beta"] = jax.random.uniform(kbeta, (c_out,), jnp.float32, -0.5, 0.5)
            layer["running_mean"] = jax.random.uniform(km, (c_out,), jnp.float32, -0.5, 0.5)
            layer["running_var"] = jax.random.uniform(kv, (c_out,), jnp.float32, 0.5, 1.5)
        params.append(layer)
    return params


def mlp_forward(points, params, *, squeeze=True, eps=1e-5, tn=8192,
                compute_dtype=jnp.float32, out_dtype=jnp.float32,
                vmem_limit_bytes=None):
    """points: [B, C, N] (squeeze=True path of the PyTorch module)."""
    assert squeeze, "this wrapper implements the [B, C, N] / squeeze=True path"

    # Fold conv bias + eval-mode BN into (scaled weight, shift); tiny one-time
    # host-side math on [c_out, c_in] / [c_out] tensors.
    layers = []
    for layer in params:
        c_out = layer["w"].shape[0]
        w = layer["w"].astype(jnp.float32)
        if layer["bn"]:
            inv_std = 1.0 / jnp.sqrt(layer["running_var"] + eps)
            scale = layer["gamma"] * inv_std
            w = w * scale[:, None]
            shift = layer["beta"] + (layer["bias"] - layer["running_mean"]) * scale
        else:
            shift = layer["bias"]
        layers.append((w, shift.reshape(c_out, 1), layer["relu"]))

    return fused_pointwise_mlp(points, layers, tn=tn,
                               compute_dtype=compute_dtype,
                               out_dtype=out_dtype,
                               vmem_limit_bytes=vmem_limit_bytes)


def mlp_reference(points, params, eps=1e-5):
    """Pure-JAX reference of the same forward pass (for sanity checking)."""
    x = jnp.transpose(points, (0, 2, 1))  # [B, N, C]
    for layer in params:
        y = jnp.einsum("bnc,dc->bnd", x, layer["w"]) + layer["bias"]
        if layer["bn"]:
            y = (y - layer["running_mean"]) / jnp.sqrt(layer["running_var"] + eps)
            y = y * layer["gamma"] + layer["beta"]
        if layer["relu"]:
            y = jnp.maximum(y, 0.0)
        x = y
    return jnp.transpose(x, (0, 2, 1))  # [B, D, N]


if __name__ == "__main__":
    key = jax.random.PRNGKey(0)
    k_params, k_points = jax.random.split(key)

    # Module config: MLP(in_channel=4, mlp=[32, 64], relu=[1, 1], bn=[1, 0])
    in_channel = 4
    mlp_dims = [32, 64]
    relu = [True, True]
    bn = [True, False]

    params = init_mlp_params(k_params, in_channel, mlp_dims, relu, bn)

    # Input: [B, C, N] = [2, 4, 16], used with squeeze=True.
    B, C, N = 2, 4, 16
    points = jax.random.normal(k_points, (B, C, N), jnp.float32)

    out = mlp_forward(points, params, squeeze=True)
    out = jax.block_until_ready(out)
    assert out.shape == (B, mlp_dims[-1], N), out.shape

    ref = jax.block_until_ready(mlp_reference(points, params))
    assert jnp.allclose(out, ref, atol=1e-4, rtol=1e-4), "mismatch vs reference"

    print("KERNEL_OK")
</pallas_src>

<mosaic_0001>
module attributes {stable_mosaic.version = 11 : i64} {
  func.func @_fused_mlp_kernel(%arg0: i32, %arg1: i32, %arg2: memref<1x4x128xf32, #tpu.memory_space<vmem>>, %arg3: memref<32x4xf32, #tpu.memory_space<vmem>>, %arg4: memref<32x1xf32, #tpu.memory_space<vmem>>, %arg5: memref<64x32xf32, #tpu.memory_space<vmem>>, %arg6: memref<64x1xf32, #tpu.memory_space<vmem>>, %arg7: memref<1x64x128xf32, #tpu.memory_space<vmem>>) attributes {dimension_semantics = [#tpu.dimension_semantics<parallel>, #tpu.dimension_semantics<parallel>], iteration_bounds = array<i64: 2, 1>, scalar_prefetch = 0 : i64, scratch_operands = 0 : i64, tpu.core_type = #tpu.core_type<tc>, window_params = [{transform_indices = @transform_0, window_bounds = array<i64: 1, 4, 128>}, {pipeline_mode = #tpu.pipeline_mode<synchronous>, transform_indices = @transform_1, window_bounds = array<i64: 32, 4>}, {pipeline_mode = #tpu.pipeline_mode<synchronous>, transform_indices = @transform_2, window_bounds = array<i64: 32, 1>}, {pipeline_mode = #tpu.pipeline_mode<synchronous>, transform_indices = @transform_3, window_bounds = array<i64: 64, 32>}, {pipeline_mode = #tpu.pipeline_mode<synchronous>, transform_indices = @transform_4, window_bounds = array<i64: 64, 1>}, {transform_indices = @transform_5, window_bounds = array<i64: 1, 64, 128>}]} {
    %c0 = arith.constant 0 : index
    %c0_0 = arith.constant 0 : index
    %c0_1 = arith.constant 0 : index
    %0 = vector.load %arg2[%c0, %c0_0, %c0_1] : memref<1x4x128xf32, #tpu.memory_space<vmem>>, vector<1x4x128xf32>
    %1 = vector.shape_cast %0 : vector<1x4x128xf32> to vector<4x128xf32>
    %c0_2 = arith.constant 0 : index
    %c0_3 = arith.constant 0 : index
    %2 = vector.load %arg3[%c0_2, %c0_3] : memref<32x4xf32, #tpu.memory_space<vmem>>, vector<32x4xf32>
    %c0_4 = arith.constant 0 : index
    %c0_5 = arith.constant 0 : index
    %3 = vector.load %arg4[%c0_4, %c0_5] : memref<32x1xf32, #tpu.memory_space<vmem>>, vector<32x1xf32>
    %cst = arith.constant dense<0.000000e+00> : vector<32x128xf32>
    %4 = tpu.matmul %2, %1, %cst {dimension_numbers = #tpu.dot_dimension_numbers<[1], [0], [0], [1], [0, 0, 1, 1], [], []>} : vector<32x4xf32>, vector<4x128xf32>, vector<32x128xf32> -> vector<32x128xf32>
    %5 = vector.broadcast %3 : vector<32x1xf32> to vector<32x128xf32>
    %6 = arith.addf %4, %5 : vector<32x128xf32>
    %cst_6 = arith.constant 0.000000e+00 : f32
    %7 = vector.broadcast %cst_6 : f32 to vector<32x128xf32>
    %8 = arith.maximumf %6, %7 : vector<32x128xf32>
    %c0_7 = arith.constant 0 : index
    %c0_8 = arith.constant 0 : index
    %9 = vector.load %arg5[%c0_7, %c0_8] : memref<64x32xf32, #tpu.memory_space<vmem>>, vector<64x32xf32>
    %c0_9 = arith.constant 0 : index
    %c0_10 = arith.constant 0 : index
    %10 = vector.load %arg6[%c0_9, %c0_10] : memref<64x1xf32, #tpu.memory_space<vmem>>, vector<64x1xf32>
    %cst_11 = arith.constant dense<0.000000e+00> : vector<64x128xf32>
    %11 = tpu.matmul %9, %8, %cst_11 {dimension_numbers = #tpu.dot_dimension_numbers<[1], [0], [0], [1], [0, 0, 1, 1], [], []>} : vector<64x32xf32>, vector<32x128xf32>, vector<64x128xf32> -> vector<64x128xf32>
    %12 = vector.broadcast %10 : vector<64x1xf32> to vector<64x128xf32>
    %13 = arith.addf %11, %12 : vector<64x128xf32>
    %cst_12 = arith.constant 0.000000e+00 : f32
    %14 = vector.broadcast %cst_12 : f32 to vector<64x128xf32>
    %15 = arith.maximumf %13, %14 : vector<64x128xf32>
    %c0_13 = arith.constant 0 : index
    %c0_14 = arith.constant 0 : index
    %c0_15 = arith.constant 0 : index
    %16 = vector.load %arg7[%c0_13, %c0_14, %c0_15] : memref<1x64x128xf32, #tpu.memory_space<vmem>>, vector<1x64x128xf32>
    %17 = vector.shape_cast %16 : vector<1x64x128xf32> to vector<64x128xf32>
    %18 = vector.shape_cast %15 : vector<64x128xf32> to vector<1x64x128xf32>
    tpu.vector_store %arg7[%c0_13, %c0_14, %c0_15], %18 {strides = array<i32>} : memref<1x64x128xf32, #tpu.memory_space<vmem>>, vector<1x64x128xf32>,
    return
  }
  func.func @transform_0(%arg0: i32, %arg1: i32) -> (i32, i32, i32) {
    %c0_i32 = arith.constant 0 : i32
    %c0_i32_0 = arith.constant 0 : i32
    return %arg0, %c0_i32, %arg1 : i32, i32, i32
  }
  func.func @transform_1(%arg0: i32, %arg1: i32) -> (i32, i32) {
    %c0_i32 = arith.constant 0 : i32
    %c0_i32_0 = arith.constant 0 : i32
    %c0_i32_1 = arith.constant 0 : i32
    return %c0_i32, %c0_i32_0 : i32, i32
  }
  func.func @transform_2(%arg0: i32, %arg1: i32) -> (i32, i32) {
    %c0_i32 = arith.constant 0 : i32
    %c0_i32_0 = arith.constant 0 : i32
    %c0_i32_1 = arith.constant 0 : i32
    return %c0_i32, %c0_i32_0 : i32, i32
  }
  func.func @transform_3(%arg0: i32, %arg1: i32) -> (i32, i32) {
    %c0_i32 = arith.constant 0 : i32
    %c0_i32_0 = arith.constant 0 : i32
    %c0_i32_1 = arith.constant 0 : i32
    return %c0_i32, %c0_i32_0 : i32, i32
  }
  func.func @transform_4(%arg0: i32, %arg1: i32) -> (i32, i32) {
    %c0_i32 = arith.constant 0 : i32
    %c0_i32_0 = arith.constant 0 : i32
    %c0_i32_1 = arith.constant 0 : i32
    return %c0_i32, %c0_i32_0 : i32, i32
  }
  func.func @transform_5(%arg0: i32, %arg1: i32) -> (i32, i32, i32) {
    %c0_i32 = arith.constant 0 : i32
    %c0_i32_0 = arith.constant 0 : i32
    return %arg0, %c0_i32, %arg1 : i32, i32, i32
  }
}

</mosaic_0001>

<bundles_post_ra>
// kernel: tpu_custom_call.1
= control target key start
LH: loop header
LB: loop body
LE: loop exit
PB: predicated region body
PF: predicated region fallthrough
CT: control target
= control target key end

     0   :  { %s833_s18 = smov 0   ;;  %s835_s19 = smov 0   ;;  %s954_s0 = inlined_call_operand.vmem [shape: f32[2,4,16], index: 0, kind: input, shape index: {}]   ;;  %s955_s1 = inlined_call_operand.vmem [shape: f32[32,4], index: 1, kind: input, shape index: {}]   ;;  %s956_s2 = inlined_call_operand.vmem [shape: f32[32,1], index: 2, kind: input, shape index: {}]   ;;  %s957_s3 = inlined_call_operand.vmem [shape: f32[64,32], index: 3, kind: input, shape index: {}]   ;;  %s958_s4 = inlined_call_operand.vmem [shape: f32[64,1], index: 4, kind: input, shape index: {}]   ;;  %s959_s5 = inlined_call_operand.vmem [shape: f32[2,64,16], index: 5, kind: output, shape index: {}]  }
   0x1   :  { %s837_s20 = smov 0  }
   0x2 LB: > { %s27_s21 = sadd.s32 1, %s796_s19  ;;  %p674_p0 = scmp.ge.s32.totalorder %s800_s20, 1  ;;  %s800_s20 = sphi %s837_s20, %s15_s20   ;;  %s796_s19 = sphi %s835_s19, %s961_s19   ;;  %s792_s18 = sphi %s833_s18, %s960_s18  }
   0x3   : > { %p29_p1 = scmp.ge.s32.totalorder %s27_s21, 2  ;;  %p205_p2 = scmp.lt.s32.totalorder %s800_s20, 3 }
   0x5   : > { %s963_s21 = smov (%p29_p1, %s27_s21), 0  ;;  %p206_p3 = pnand %p674_p0, %p205_p2 }
   0x6   : > { %p238_p4 = scmp.lt.s32.totalorder (!%p206_p3), %s792_s18, 1  ;;  %v254_v0 = vld [vmem:[%s955_s1] sm:$0xff] (!%p206_p3)  ;;  %vm282_vm0 = vcmask (!%p206_p3), 31744   ;;  %v260_v2 = vld [vmem:[%s956_s2 + $0x10] sm:$0xff] (!%p206_p3)  ;;  %v802_v3 = vmov (!%p206_p3), 0   ;;  %vm295_vm1 = vcmask (!%p206_p3), 1043456  }
   0x7   : > { %209 = sbr.rel (%p206_p3) target bundleno = 473 (0x1d9), region = 40  ;;  %713 = vmatprep.mubr.msk.f32.mxu0 (!%p206_p3), %vm282_vm0, %v254_v0  ;;  %v258_v1 = vld [vmem:[%s956_s2] sm:$0xff] (!%p206_p3)  ;;  %776 = vset.pattern.permute.xlu0 (!%p206_p3), %v802_v3  ;;  %v259_v4 = vld [vmem:[%s956_s2 + $0x8] sm:$0xff] (!%p206_p3)  ;;  %v261_v5 = vld [vmem:[%s956_s2 + $0x18] sm:$0xff] (!%p206_p3)  ;;  %vm444_vm2 = vcmask (!%p206_p3), 261120  }
   0x8   : > { %777 = vset.pattern.permute.xlu1 (!%p206_p3), %v802_v3  ;;  %264 = vperm.xlu0 (!%p206_p3), %776, %v258_v1   ;;  %v255_v7 = vld [vmem:[%s955_s1 + $0x8] sm:$0xff] (!%p206_p3)  ;;  %v256_v8 = vld [vmem:[%s955_s1 + $0x10] sm:$0xff] (!%p206_p3)  ;;  %v396_v9 = vld [vmem:[%s958_s4] sm:$0xff] (!%p206_p3) }
   0x9   : > { %274 = vperm.xlu1 (!%p206_p3), %777, %v260_v2   ;;  %v397_v10 = vld [vmem:[%s958_s4 + $0x8] sm:$0xff] (!%p206_p3)  ;;  %v257_v11 = vld [vmem:[%s955_s1 + $0x18] sm:$0xff] (!%p206_p3)  ;;  %v398_v12 = vld [vmem:[%s958_s4 + $0x10] sm:$0xff] (!%p206_p3) }
   0xa   : > { %v399_v13 = vld [vmem:[%s958_s4 + $0x18] sm:$0xff] (!%p206_p3)  ;;  %v400_v14 = vld [vmem:[%s958_s4 + $0x20] sm:$0xff] (!%p206_p3)  ;;  %v401_v15 = vld [vmem:[%s958_s4 + $0x28] sm:$0xff] (!%p206_p3) }
   0xb   : > { %v402_v16 = vld [vmem:[%s958_s4 + $0x30] sm:$0xff] (!%p206_p3)  ;;  %v403_v17 = vld [vmem:[%s958_s4 + $0x38] sm:$0xff] (!%p206_p3)  ;;  %v388_v18 = vld [vmem:[%s957_s3] sm:$0xff] (!%p206_p3) }
   0xc   : > { %269 = vperm.xlu0 (!%p206_p3), %776, %v259_v4   ;;  %v390_v19 = vld [vmem:[%s957_s3 + $0x10] sm:$0xff] (!%p206_p3)  ;;  %v389_v38 = vld [vmem:[%s957_s3 + $0x8] sm:$0xff] (!%p206_p3)  ;;  %v391_v39 = vld [vmem:[%s957_s3 + $0x18] sm:$0xff] (!%p206_p3) }
   0xd   : > { %279 = vperm.xlu1 (!%p206_p3), %777, %v261_v5   ;;  %730 = vmatprep.mubr.msk.f32.mxu1 (!%p206_p3), %vm444_vm2, %v390_v19  ;;  %v392_v40 = vld [vmem:[%s957_s3 + $0x20] sm:$0xff] (!%p206_p3)  ;;  %v393_v41 = vld [vmem:[%s957_s3 + $0x28] sm:$0xff] (!%p206_p3)  ;;  %v394_v42 = vld [vmem:[%s957_s3 + $0x30] sm:$0xff] (!%p206_p3) }
   0xe   : > { %s965_s18 = smov (!%p238_p4, %s792_s18), 1  ;;  %v395_v43 = vld [vmem:[%s957_s3 + $0x38] sm:$0xff] }
   0xf   : > { %s675_s28 = sshll.u32 %s965_s18, 2  ;;  %s693_s7 = sshll.u32 %s965_s18, 6 }
  0x10   : > { %s244_s8 = scalar_lea.vmem %s954_s0, %s675_s28  ;;  %406 = vperm.xlu0 %776, %v396_v9   ;;  %s252_s10 = scalar_lea.vmem %s959_s5, %s693_s7 }
  0x11   : > { %v253_v6 = vld [vmem:[%s244_s8] sm:$0xf]  ;;  %411 = vperm.xlu1 %777, %v397_v10  }
  0x12   : > { %711 = vmatprep.subr.msk.mxu0 %vm295_vm1, %v253_v6 }
  0x13   : > { %712 = vmatpush3.msk.msra.mxu0 %vm295_vm1, %v253_v6 }
  0x14   : > { %714 = vmatmul.mubr.msk.f32.vlgmr.msra.gmra.mrb[0].mxu0 %vm282_vm0, %v255_v7  ;;  %416 = vperm.xlu0 %776, %v398_v12  }
  0x15   : > { %716 = vmatprep.mubr.msk.f32.mxu0 %vm282_vm0, %v256_v8  ;;  %421 = vperm.xlu1 %777, %v399_v13  }
  0x18   : > { %717 = vmatmul.mubr.msk.f32.gmra.mrb[2].mxu0 %vm282_vm0, %v257_v11  ;;  %426 = vperm.xlu0 %776, %v400_v14  }
  0x19   : > { %431 = vperm.xlu1 %777, %v401_v15   ;;  %727 = vmatprep.mubr.msk.f32.mxu0 %vm444_vm2, %v388_v18 }
  0x1c   : > { %436 = vperm.xlu0 %776, %v402_v16  }
  0x1d   : > { %441 = vperm.xlu1 %777, %v403_v17  }
  0x87   : > { %v265_v20 = vpop.permute.xlu0 %264 }
  0x88   : > { %v275_v21 = vpop.permute.xlu1 %274 }
  0x8b   : > { %v270_v22 = vpop.permute.xlu0 %269 }
  0x8c   : > { %v280_v28 = vpop.permute.xlu1 %279 }
  0x8f   : > { %v407_v45 = vpop.permute.xlu0 %406 }
  0x90   : > { %v412_v44 = vpop.permute.xlu1 %411 }
  0x93   : > { %v417_v47 = vpop.permute.xlu0 %416 }
  0x94   : > { %v422_v46 = vpop.permute.xlu1 %421 }
  0x97   : > { %v427_v57 = vpop.permute.xlu0 %426 }
  0x98   : > { %v432_v54 = vpop.permute.xlu1 %431 }
  0x9b   : > { %v437_v6 = vpop.permute.xlu0 %436 }
  0x9c   : > { %v442_v3 = vpop.permute.xlu1 %441 }
  0xe7   : > { %v715_v23 = vpop.f32.mrb[0].mxu0 }
  0xe8   : > { %v371_v24 = vadd.f32 %v715_v23, %v270_v22  ;;  %v365_v25 = vpop.f32.mrb[1].mxu0 }
  0xe9   : > { %v366_v26 = vadd.f32 %v365_v25, %v265_v20 }
  0xea   : > { %v385_v27 = vmax.f32 %v371_v24, 0.0 }
  0xeb   : > { %v384_v29 = vmax.f32 %v366_v26, 0.0  ;;  %v718_v30 = vpop.f32.mrb[2].mxu0 }
  0xec   : > { %v381_v31 = vadd.f32 %v718_v30, %v280_v28  ;;  %v375_v32 = vpop.f32.mrb[3].mxu0 }
  0xed   : > { %v739_v33 = vpack.c.bf16 %v385_v27, %v384_v29  ;;  %v376_v34 = vadd.f32 %v375_v32, %v275_v21 }
  0xee   : > { %v387_v35 = vmax.f32 %v381_v31, 0.0 }
  0xef   : > { %v386_v36 = vmax.f32 %v376_v34, 0.0  ;;  %740 = vmatprep.subr.bf16.mxu0 %v739_v33  ;;  %747 = vmatprep.subr.bf16.mxu1 %v739_v33 }
  0xf0   : > { %742 = vmatpush3.bf16.msra.mxu0 %v739_v33  ;;  %749 = vmatpush3.bf16.msra.mxu1 %v739_v33 }
  0xf1   : > { %v743_v37 = vpack.c.bf16 %v387_v35, %v386_v36 }
  0xf3   : > { %744 = vmatprep.subr.bf16.mxu0 %v743_v37  ;;  %748 = vmatprep.subr.bf16.mxu1 %v743_v37 }
  0xf4   : > { %746 = vmatpush3.bf16.msra.mxu0 %v743_v37  ;;  %750 = vmatpush3.bf16.msra.mxu1 %v743_v37 }
  0xf7   : > { %728 = vmatmul.mubr.msk.f32.vlgmr.msra.gmra.mrb[4].mxu0 %vm444_vm2, %v389_v38  ;;  %731 = vmatmul.mubr.msk.f32.vlgmr.msra.gmra.mrb[0].mxu1 %vm444_vm2, %v391_v39 }
  0xf8   : > { %733 = vmatprep.mubr.msk.f32.mxu1 %vm444_vm2, %v392_v40 }
  0xfb   : > { %734 = vmatmul.mubr.msk.f32.gmra.mrb[2].mxu1 %vm444_vm2, %v393_v41 }
  0xfc   : > { %736 = vmatprep.mubr.msk.f32.mxu1 %vm444_vm2, %v394_v42 }
  0xff   : > { %737 = vmatmul.mubr.msk.f32.gmra.mrb[4].mxu1 %vm444_vm2, %v395_v43 }
 0x1ca   : > { %v729_v48 = vpop.f32.mrb[4].mxu0  ;;  %v732_v49 = vpop.f32.mrb[0].mxu1 }
 0x1cb   : > { %v541_v50 = vadd.f32 %v729_v48, %v412_v44  ;;  %v551_v51 = vadd.f32 %v732_v49, %v422_v46  ;;  %v535_v52 = vpop.f32.mrb[5].mxu0  ;;  %v545_v53 = vpop.f32.mrb[1].mxu1 }
 0x1cc   : > { %v536_v55 = vadd.f32 %v535_v52, %v407_v45  ;;  %v546_v56 = vadd.f32 %v545_v53, %v417_v47 }
 0x1cd   : > { %v575_v58 = vmax.f32 %v541_v50, 0.0  ;;  %v577_v59 = vmax.f32 %v551_v51, 0.0 }
 0x1ce   : > { %v574_v60 = vmax.f32 %v536_v55, 0.0  ;;  %v576_v61 = vmax.f32 %v546_v56, 0.0  ;;  %v735_v62 = vpop.f32.mrb[2].mxu1 }
 0x1cf   : > { %583 = vst [vmem:[%s252_s10 + $0x8] sm:$0xff] %v575_v58  ;;  %585 = vst [vmem:[%s252_s10 + $0x18] sm:$0xff] %v577_v59  ;;  %v561_v63 = vadd.f32 %v735_v62, %v432_v54  ;;  %v555_v0 = vpop.f32.mrb[3].mxu1 }
 0x1d0   : > { %582 = vst [vmem:[%s252_s10] sm:$0xff] %v574_v60  ;;  %584 = vst [vmem:[%s252_s10 + $0x10] sm:$0xff] %v576_v61  ;;  %v556_v1 = vadd.f32 %v555_v0, %v427_v57 }
 0x1d1   : > { %v579_v2 = vmax.f32 %v561_v63, 0.0 }
 0x1d2   : > { %v578_v4 = vmax.f32 %v556_v1, 0.0  ;;  %v738_v5 = vpop.f32.mrb[4].mxu1 }
 0x1d3   : > { %587 = vst [vmem:[%s252_s10 + $0x28] sm:$0xff] %v579_v2  ;;  %v571_v7 = vadd.f32 %v738_v5, %v442_v3  ;;  %v565_v8 = vpop.f32.mrb[5].mxu1 }
 0x1d4   : > { %586 = vst [vmem:[%s252_s10 + $0x20] sm:$0xff] %v578_v4  ;;  %v566_v9 = vadd.f32 %v565_v8, %v437_v6 }
 0x1d5   : > { %v581_v10 = vmax.f32 %v571_v7, 0.0 }
 0x1d6   : > { %v580_v11 = vmax.f32 %v566_v9, 0.0 }
 0x1d7   : > { %589 = vst [vmem:[%s252_s10 + $0x38] sm:$0xff] %v581_v10 }
 0x1d8   : > { %588 = vst [vmem:[%s252_s10 + $0x30] sm:$0xff] %v580_v11 }
 0x1d9 PF: > { %s15_s20 = sadd.s32 1, %s800_s20   ;;  %s960_s18 = smov %s796_s19 }
 0x1da   : > { %p12_p5 = scmp.ge.s32.totalorder %s15_s20, 4   ;;  %s961_s19 = smov %s963_s21 }
 0x1dc   :  { %14 = sbr.rel (!%p12_p5) target bundleno = 2 (0x2), region = 70 }

</bundles_post_ra>
